<compile_context>
chip_gen: v7x
topology: tpu7x:2x2x1
jax: 0.10.0
libtpu: 0.0.40
codegen_flags: <defaults>
</compile_context>

<pallas_src>
import functools

import numpy as np
import jax
import jax.numpy as jnp
from jax.experimental import pallas as pl
from jax.experimental.pallas import tpu as pltpu

_LANES = 128
_VMEM_LIMIT_BYTES = 32 * 1024 * 1024     # explicit scoped-VMEM limit (safe on v5e..v7x)
_VMEM_BUDGET = int(0.8 * _VMEM_LIMIT_BYTES)


def _round_up(x, m):
    return ((x + m - 1) // m) * m


def _cdiv(a, b):
    return -(-a // b)


# ----------------------------- kernels ----------------------------------------

def _head_kernel_resident(x_ref, w_ref, b_ref, o_ref):
    # x_ref: [tm, F] batch tile; w_ref: [F, nc_pad] VMEM-resident; b_ref: [1, nc_pad] f32.
    acc = jnp.dot(x_ref[...], w_ref[...], preferred_element_type=jnp.float32)
    o_ref[...] = (acc + b_ref[...]).astype(o_ref.dtype)


def _head_kernel_ktiled(x_ref, w_ref, b_ref, o_ref, acc_ref):
    # grid = (batch_tiles, k_tiles); reduction axis last; f32 accumulator scratch.
    k = pl.program_id(1)

    @pl.when(k == 0)
    def _():
        acc_ref[...] = jnp.zeros_like(acc_ref)

    acc_ref[...] += jnp.dot(x_ref[...], w_ref[...], preferred_element_type=jnp.float32)

    @pl.when(k == pl.num_programs(1) - 1)
    def _():
        o_ref[...] = (acc_ref[...] + b_ref[...]).astype(o_ref.dtype)


# ----------------------------- one-time param prep ----------------------------

def prepare_head_params(weight, bias, *, compute_dtype=jnp.bfloat16):
    """Lane-pad the class dim to a 128 multiple and cast W ONCE (outside the hot path).

    weight: [F, n_classes] (transpose of torch's [n_classes, F]); bias: [n_classes].
    Returns (w_pad [F, nc_pad] in compute_dtype, b_pad [1, nc_pad] f32).
    Zero-padded columns produce exact zeros that the wrapper slices off.
    """
    feat, n_classes = weight.shape
    nc_pad = _round_up(n_classes, _LANES)
    if nc_pad != n_classes:
        weight = jnp.pad(weight, ((0, 0), (0, nc_pad - n_classes)))
        bias = jnp.pad(bias, (0, nc_pad - n_classes))
    if compute_dtype is not None:
        weight = weight.astype(compute_dtype)
    b_pad = bias.reshape(1, nc_pad).astype(jnp.float32)
    return weight, b_pad


# ----------------------------- forward wrapper ---------------------------------

@functools.partial(
    jax.jit,
    static_argnames=("n_classes", "compute_dtype", "block_bs", "block_k", "force_k_tiled"),
)
def classification_head(x, w_pad, b_pad, *, n_classes, compute_dtype=jnp.bfloat16,
                        block_bs=512, block_k=None, force_k_tiled=False):
    """x: [bs, nvars, d_model, num_patch]; w_pad: [F, nc_pad]; b_pad: [1, nc_pad] f32."""
    bs, nvars, d_model, _ = x.shape
    feat = nvars * d_model
    nc_pad = w_pad.shape[1]
    if w_pad.shape[0] != feat:
        raise ValueError("weight feature dim does not match nvars * d_model")
    out_dtype = x.dtype

    # Last patch + Flatten(start_dim=1). Kept as a separate, contiguous XLA fusion
    # (NOT fused into the Pallas input DMA -> no element-strided HBM gather).
    x_last = x[:, :, :, -1].reshape(bs, feat)
    # Dropout is identity at inference.
    # TODO(synk): training-mode dropout (pltpu.prng_*) not implemented; eval semantics only.

    if compute_dtype is not None:
        x_last = x_last.astype(compute_dtype)
        if w_pad.dtype != np.dtype(compute_dtype):   # no-op when prepare_head_params pre-cast
            w_pad = w_pad.astype(compute_dtype)

    x_it = np.dtype(x_last.dtype).itemsize
    w_it = np.dtype(w_pad.dtype).itemsize
    o_it = np.dtype(out_dtype).itemsize

    sublane = 16 if x_last.dtype == np.dtype(jnp.bfloat16) else 8
    bs_pad0 = _round_up(bs, sublane)

    w_bytes = feat * nc_pad * w_it
    # Resident-W feasibility: single-buffered W + double-buffered minimal x/out tiles.
    resident_ok = (not force_k_tiled) and (
        w_bytes + nc_pad * 4
        + 2 * sublane * feat * x_it
        + 2 * sublane * nc_pad * o_it
        <= _VMEM_BUDGET
    )

    if resident_ok:
        # Batch tile size from the VMEM budget (double-buffered x + out rows).
        per_row = 2 * feat * x_it + 2 * nc_pad * o_it
        tm_mem = (_VMEM_BUDGET - w_bytes - nc_pad * 4) // per_row
        tm_mem = max(sublane, (tm_mem // sublane) * sublane)
        tm = min(_round_up(block_bs, sublane), bs_pad0, tm_mem)
        # v7x megacore: keep >=2 tiles on the "parallel" batch axis whenever possible.
        if bs_pad0 >= 2 * sublane:
            tm = min(tm, _round_up(_cdiv(bs_pad0, 2), sublane))
        bs_pad = _round_up(bs, tm)
        if bs_pad != bs:
            x_last = jnp.pad(x_last, ((0, bs_pad - bs), (0, 0)))
        grid = (bs_pad // tm,)

        cost = pl.CostEstimate(
            flops=2 * bs_pad * feat * nc_pad,
            transcendentals=0,
            bytes_accessed=(bs_pad * feat * x_it + w_bytes + nc_pad * 4
                            + bs_pad * nc_pad * o_it),
        )

        out = pl.pallas_call(
            _head_kernel_resident,
            out_shape=jax.ShapeDtypeStruct((bs_pad, nc_pad), out_dtype),
            grid_spec=pltpu.PrefetchScalarGridSpec(
                num_scalar_prefetch=0,
                grid=grid,
                in_specs=[
                    pl.BlockSpec((tm, feat), lambda i: (i, 0)),          # batch tile
                    pl.BlockSpec((feat, nc_pad), lambda i: (0, 0),       # W: one DMA,
                                 pipeline_mode=pl.Buffered(1)),          # single buffer
                    pl.BlockSpec((1, nc_pad), lambda i: (0, 0),
                                 pipeline_mode=pl.Buffered(1)),
                ],
                out_specs=pl.BlockSpec((tm, nc_pad), lambda i: (i, 0)),
            ),
            compiler_params=pltpu.CompilerParams(
                dimension_semantics=("parallel",),
                vmem_limit_bytes=_VMEM_LIMIT_BYTES,
            ),
            cost_estimate=cost,
        )(x_last, w_pad, b_pad)

    else:
        # K-tiled fallback: W (feat x nc_pad) does not fit the VMEM budget (or forced).
        tm = min(_round_up(block_bs, sublane), bs_pad0)
        if bs_pad0 >= 2 * sublane:
            tm = min(tm, _round_up(_cdiv(bs_pad0, 2), sublane))
        # tk from budget: double-buffered x/W tiles + double-buffered out + f32 acc.
        fixed = 2 * tm * nc_pad * o_it + tm * nc_pad * 4 + 2 * nc_pad * 4
        per_k = 2 * tm * x_it + 2 * nc_pad * w_it
        tk_mem = max(_LANES, ((_VMEM_BUDGET - fixed) // per_k) // _LANES * _LANES)
        tk = tk_mem if block_k is None else _round_up(block_k, _LANES)
        feat_pad = _round_up(feat, tk)
        tk = min(tk, feat_pad)
        feat_pad = _round_up(feat, tk)

        bs_pad = _round_up(bs, tm)
        # Zero-padded feature columns / weight rows contribute exactly zero.
        x_last = jnp.pad(x_last, ((0, bs_pad - bs), (0, feat_pad - feat)))
        if feat_pad != feat:
            w_pad = jnp.pad(w_pad, ((0, feat_pad - feat), (0, 0)))

        grid = (bs_pad // tm, feat_pad // tk)

        cost = pl.CostEstimate(
            flops=2 * bs_pad * feat_pad * nc_pad,
            transcendentals=0,
            bytes_accessed=(bs_pad * feat_pad * x_it
                            + (bs_pad // tm) * feat_pad * nc_pad * w_it
                            + nc_pad * 4 + bs_pad * nc_pad * o_it),
        )

        out = pl.pallas_call(
            _head_kernel_ktiled,
            out_shape=jax.ShapeDtypeStruct((bs_pad, nc_pad), out_dtype),
            grid_spec=pltpu.PrefetchScalarGridSpec(
                num_scalar_prefetch=0,
                grid=grid,
                in_specs=[
                    pl.BlockSpec((tm, tk), lambda i, k: (i, k)),
                    pl.BlockSpec((tk, nc_pad), lambda i, k: (k, 0)),
                    pl.BlockSpec((1, nc_pad), lambda i, k: (0, 0),
                                 pipeline_mode=pl.Buffered(1)),
                ],
                out_specs=pl.BlockSpec((tm, nc_pad), lambda i, k: (i, 0)),
                scratch_shapes=[pltpu.VMEM((tm, nc_pad), jnp.float32)],
            ),
            compiler_params=pltpu.CompilerParams(
                dimension_semantics=("parallel", "arbitrary"),
                vmem_limit_bytes=_VMEM_LIMIT_BYTES,
            ),
            cost_estimate=cost,
        )(x_last, w_pad, b_pad)

    # Strip batch / lane padding before anything downstream sees it.
    return out[:bs, :n_classes]


def init_params(key, n_vars, d_model, n_classes, dtype=jnp.float32):
    """Deterministic nn.Linear-style init: U(-1/sqrt(fan_in), 1/sqrt(fan_in))."""
    fan_in = n_vars * d_model
    kw, kb = jax.random.split(key)
    bound = 1.0 / jnp.sqrt(jnp.float32(fan_in))
    # Stored as [F, n_classes] (transpose of torch's [n_classes, F]).
    weight = jax.random.uniform(kw, (fan_in, n_classes), dtype, -bound, bound)
    bias = jax.random.uniform(kb, (n_classes,), dtype, -bound, bound)
    return weight, bias


if __name__ == "__main__":
    key = jax.random.PRNGKey(0)
    k1, k2, k3, k4 = jax.random.split(key, 4)

    # ---- resident-W path ------------------------------------------------------
    bs, n_vars, d_model, num_patch, n_classes = 2, 4, 32, 8, 5
    x = jax.random.normal(k1, (bs, n_vars, d_model, num_patch), jnp.float32)
    weight, bias = init_params(k2, n_vars, d_model, n_classes)
    ref = x[:, :, :, -1].reshape(bs, n_vars * d_model) @ weight + bias

    # Default bf16 operand path (f32 accumulation); params prepped once.
    w_bf16, b_pad = prepare_head_params(weight, bias)
    y_bf16 = classification_head(x, w_bf16, b_pad, n_classes=n_classes)
    jax.block_until_ready(y_bf16)
    assert y_bf16.shape == (bs, n_classes)
    assert jnp.allclose(y_bf16, ref, atol=5e-2, rtol=5e-2)

    # Exact f32 operand path.
    w_f32, b_pad32 = prepare_head_params(weight, bias, compute_dtype=None)
    y_f32 = classification_head(x, w_f32, b_pad32, n_classes=n_classes, compute_dtype=None)
    jax.block_until_ready(y_f32)
    assert y_f32.shape == (bs, n_classes)
    assert jnp.allclose(y_f32, ref, atol=1e-4, rtol=1e-4)

    # ---- K-tiled fallback path (forced; 2 reduction steps) ---------------------
    d_model2 = 64
    x2 = jax.random.normal(k3, (bs, n_vars, d_model2, num_patch), jnp.float32)
    weight2, bias2 = init_params(k4, n_vars, d_model2, n_classes)
    ref2 = x2[:, :, :, -1].reshape(bs, n_vars * d_model2) @ weight2 + bias2
    w2_f32, b2_pad = prepare_head_params(weight2, bias2, compute_dtype=None)
    y_kt = classification_head(x2, w2_f32, b2_pad, n_classes=n_classes,
                               compute_dtype=None, block_k=128, force_k_tiled=True)
    jax.block_until_ready(y_kt)
    assert y_kt.shape == (bs, n_classes)
    assert jnp.allclose(y_kt, ref2, atol=1e-4, rtol=1e-4)

    print("KERNEL_OK")
</pallas_src>

<mosaic_0001>
module attributes {stable_mosaic.version = 11 : i64} {
  func.func @_head_kernel_resident(%arg0: i32, %arg1: memref<16x128xbf16, #tpu.memory_space<vmem>>, %arg2: memref<128x128xbf16, #tpu.memory_space<vmem>>, %arg3: memref<1x128xf32, #tpu.memory_space<vmem>>, %arg4: memref<16x128xf32, #tpu.memory_space<vmem>>) attributes {dimension_semantics = [#tpu.dimension_semantics<parallel>], iteration_bounds = array<i64: 1>, scalar_prefetch = 0 : i64, scratch_operands = 0 : i64, tpu.core_type = #tpu.core_type<tc>, window_params = [{transform_indices = @transform_0, window_bounds = array<i64: 16, 128>}, {pipeline_mode = #tpu.pipeline_mode<synchronous>, transform_indices = @transform_1, window_bounds = array<i64: 128, 128>}, {pipeline_mode = #tpu.pipeline_mode<synchronous>, transform_indices = @transform_2, window_bounds = array<i64: 1, 128>}, {transform_indices = @transform_3, window_bounds = array<i64: 16, 128>}]} {
    %c0 = arith.constant 0 : index
    %c0_0 = arith.constant 0 : index
    %0 = vector.load %arg1[%c0, %c0_0] : memref<16x128xbf16, #tpu.memory_space<vmem>>, vector<16x128xbf16>
    %c0_1 = arith.constant 0 : index
    %c0_2 = arith.constant 0 : index
    %1 = vector.load %arg2[%c0_1, %c0_2] : memref<128x128xbf16, #tpu.memory_space<vmem>>, vector<128x128xbf16>
    %cst = arith.constant dense<0.000000e+00> : vector<16x128xf32>
    %2 = tpu.matmul %0, %1, %cst {dimension_numbers = #tpu.dot_dimension_numbers<[1], [0], [0], [1], [0, 0, 1, 1], [], []>} : vector<16x128xbf16>, vector<128x128xbf16>, vector<16x128xf32> -> vector<16x128xf32>
    %c0_3 = arith.constant 0 : index
    %c0_4 = arith.constant 0 : index
    %3 = vector.load %arg3[%c0_3, %c0_4] : memref<1x128xf32, #tpu.memory_space<vmem>>, vector<1x128xf32>
    %4 = vector.broadcast %3 : vector<1x128xf32> to vector<16x128xf32>
    %5 = arith.addf %2, %4 : vector<16x128xf32>
    %c0_5 = arith.constant 0 : index
    %c0_6 = arith.constant 0 : index
    %6 = vector.load %arg4[%c0_5, %c0_6] : memref<16x128xf32, #tpu.memory_space<vmem>>, vector<16x128xf32>
    tpu.vector_store %arg4[%c0_5, %c0_6], %5 {strides = array<i32>} : memref<16x128xf32, #tpu.memory_space<vmem>>, vector<16x128xf32>,
    return
  }
  func.func @transform_0(%arg0: i32) -> (i32, i32) {
    %c0_i32 = arith.constant 0 : i32
    %c0_i32_0 = arith.constant 0 : i32
    return %arg0, %c0_i32 : i32, i32
  }
  func.func @transform_1(%arg0: i32) -> (i32, i32) {
    %c0_i32 = arith.constant 0 : i32
    %c0_i32_0 = arith.constant 0 : i32
    %c0_i32_1 = arith.constant 0 : i32
    return %c0_i32, %c0_i32_0 : i32, i32
  }
  func.func @transform_2(%arg0: i32) -> (i32, i32) {
    %c0_i32 = arith.constant 0 : i32
    %c0_i32_0 = arith.constant 0 : i32
    %c0_i32_1 = arith.constant 0 : i32
    return %c0_i32, %c0_i32_0 : i32, i32
  }
  func.func @transform_3(%arg0: i32) -> (i32, i32) {
    %c0_i32 = arith.constant 0 : i32
    %c0_i32_0 = arith.constant 0 : i32
    return %arg0, %c0_i32 : i32, i32
  }
}

</mosaic_0001>

<bundles_post_ra>
// kernel: classification_head.1
= control target key start
LH: loop header
LB: loop body
LE: loop exit
PB: predicated region body
PF: predicated region fallthrough
CT: control target
= control target key end

     0   :  { %8 = vsyncpa [#allocation3], 0  ;;  %s233_s12 = smov [#allocation2]   ;;  %s282_s0 = inlined_call_operand.vmem [shape: bf16[16,128], index: 0, kind: input, shape index: {}]   ;;  %s283_s1 = inlined_call_operand.hbm [shape: bf16[128,128], index: 1, kind: input, shape index: {}]   ;;  %s284_s2 = inlined_call_operand.vmem [shape: f32[1,128], index: 2, kind: input, shape index: {}]   ;;  %s285_s3 = inlined_call_operand.vmem [shape: f32[16,128], index: 3, kind: output, shape index: {}]  }
   0x1   :  { %s16_s13 = sshll.u32 %s233_s12, 4  ;;  %s209_s16 = scalar_lea.hbm %s283_s1, 1024  ;;  %s17_s13 = int_to_ptr.vmem [resolvable:$true] %s16_s13 }
   0x2   :  { %p210_p0 = scmp.ne.s32.totalorder %s283_s1, %s209_s16  ;;  %p213_p1 = scmp.lt.u32.totalorder %s209_s16, %s283_s1 }
   0x4   :  { %p215_p2 = pnand %p213_p1, %p210_p0 }
   0x6   :  { %218 = shalt.err (!%p215_p2)
}
   0x7   :  { %s219_s21 = scalar_lea.vmem %s17_s13, 1024  ;;  %p224_p4 = scmp.lt.s32.totalorder %s17_s13, %s17_s13 }
   0x8   :  { %p220_p3 = scmp.ne.s32.totalorder %s17_s13, %s219_s21  ;;  %p225_p5 = scmp.lt.s32.totalorder %s219_s21, %s219_s21 }
   0xa   :  { %p226_p6 = por %p225_p5, %p224_p4 }
   0xc   :  { %p227_p7 = pnand %p226_p6, %p220_p3 }
   0xe   :  { %230 = shalt.err (!%p227_p7)
}
   0xf   :  { %s234_s22 = smov 64   ;;  %s235_s23 = smov 4  }
  0x10   :  { %22 = dma.hbm_to_vmem [thread:$0]  %s283_s1, 1024, %s17_s13, [#allocation3], %s234_s22, %s234_s22, %s235_s23  }
  0x11   :  { %231 = dma.done.wait [#allocation3], 1024  }
  0x12   :  { %232 = vsyncadd [#allocation3], 4294966272  ;;  %v236_v0 = vmov 0.0   ;;  %vm237_vm0 = vmmov 0   ;;  %v200_v1 = vld [vmem:[#allocation2] sm:$0xff]   ;;  %v201_v2 = vld [vmem:[#allocation2 + $0x8] sm:$0xff]  }
  0x13   :  { %175 = vmatprep.subr.bf16.mxu0 %v236_v0  ;;  %191 = vmatprep.mubr.msk.bf16.mxu0 %vm237_vm0, %v236_v0  ;;  %v202_v3 = vld [vmem:[#allocation2 + $0x10] sm:$0xff]   ;;  %v203_v4 = vld [vmem:[#allocation2 + $0x18] sm:$0xff]   ;;  %v204_v5 = vld [vmem:[#allocation2 + $0x20] sm:$0xff]  }
  0x14   :  { %176 = vmatpush3.bf16.msra.mxu0 %v200_v1  ;;  %v205_v6 = vld [vmem:[#allocation2 + $0x28] sm:$0xff]   ;;  %v206_v7 = vld [vmem:[#allocation2 + $0x30] sm:$0xff]   ;;  %v207_v8 = vld [vmem:[#allocation2 + $0x38] sm:$0xff]  }
  0x15   :  { %177 = vmatprep.subr.bf16.mxu0 %v236_v0  ;;  %v208_v9 = vld [vmem:[%s282_s0] sm:$0xff]  }
  0x16   :  { %v156_v10 = vld [vmem:[%s284_s2] ss:$0 sm:$0xff] }
  0x18   :  { %178 = vmatpush3.bf16.msra.mxu0 %v201_v2 }
  0x19   :  { %179 = vmatprep.subr.bf16.mxu0 %v236_v0 }
  0x1c   :  { %180 = vmatpush3.bf16.msra.mxu0 %v202_v3 }
  0x1d   :  { %181 = vmatprep.subr.bf16.mxu0 %v236_v0 }
  0x20   :  { %182 = vmatpush3.bf16.msra.mxu0 %v203_v4 }
  0x21   :  { %183 = vmatprep.subr.bf16.mxu0 %v236_v0 }
  0x24   :  { %184 = vmatpush3.bf16.msra.mxu0 %v204_v5 }
  0x25   :  { %185 = vmatprep.subr.bf16.mxu0 %v236_v0 }
  0x28   :  { %186 = vmatpush3.bf16.msra.mxu0 %v205_v6 }
  0x29   :  { %187 = vmatprep.subr.bf16.mxu0 %v236_v0 }
  0x2c   :  { %188 = vmatpush3.bf16.msra.mxu0 %v206_v7 }
  0x2d   :  { %189 = vmatprep.subr.bf16.mxu0 %v236_v0 }
  0x30   :  { %190 = vmatpush3.bf16.msra.mxu0 %v207_v8 }
  0x33   :  { %192 = vmatmul.mubr.bf16.vlgmr.msra.gmra.mrb[0].mxu0 %v208_v9 }
 0x106   :  { %v142_v11 = vpop.f32.mrb[0].mxu0 }
 0x107   :  { %v143_v12 = vadd.f32 %v156_v10, %v142_v11  ;;  %v193_v13 = vpop.f32.mrb[1].mxu0 }
 0x108   :  { %v145_v14 = vpop.f32.mrb[2].mxu0 }
 0x109   :  { %149 = vst [vmem:[%s285_s3] sm:$0xff] %v143_v12  ;;  %v146_v15 = vadd.f32 %v156_v10, %v145_v14  ;;  %v194_v16 = vpop.f32.mrb[3].mxu0 }
 0x10b   :  { %150 = vst [vmem:[%s285_s3 + $0x8] sm:$0xff] %v146_v15 }
 0x10c   :  { %155 = vsyncpa [#allocation3], 1 }

</bundles_post_ra>
